<compile_context>
chip_gen: v6e
topology: v6e:2x2x1
jax: 0.10.0
libtpu: 0.0.40
codegen_flags: <defaults>
</compile_context>

<pallas_src>
import functools

import jax
import jax.numpy as jnp
from jax.experimental import pallas as pl
from jax.experimental.pallas import tpu as pltpu

# (in_features, out_features, apply_sigmoid) for each layer, in order.
LAYER_DIMS = [
    (4, 15, True),
    (15, 15, True),
    (15, 15, True),
    (15, 15, True),
    (15, 10, True),
    (10, 10, True),
    (10, 1, False),
]
NUM_LAYERS = len(LAYER_DIMS)
IN_FEATURES = LAYER_DIMS[0][0]   # 4
F_PAD = 16                       # padded feature width (multiple of 8 sublanes)
SLAB_COLS = F_PAD + 1            # cols 0..15 = W (out, in) zero-padded, col 16 = bias


def _round_up(n, m):
    return ((n + m - 1) // m) * m


def mlp_kernel(x_ref, slab_ref, o_ref):
    """Whole MLP forward for one lane-dense batch tile, entirely in VMEM.

    x_ref    : (IN_FEATURES, TB)  float32, batch on the lane axis
    slab_ref : (NUM_LAYERS, F_PAD, SLAB_COLS) packed zero-padded params
    o_ref    : (1, TB)            final linear output (row 0 of padded acts)
    """
    h = x_ref[...]                                  # (4, TB)
    for li, (_fan_in, _fan_out, use_sigmoid) in enumerate(LAYER_DIMS):
        layer = slab_ref[li]                        # (F_PAD, SLAB_COLS)
        k = IN_FEATURES if li == 0 else F_PAD       # contraction width
        w = layer[:, :k]                            # (F_PAD, k), zero-padded
        b = layer[:, F_PAD:F_PAD + 1]               # (F_PAD, 1), zero-padded
        # h' = W @ h + b ; padded rows/cols are zero so garbage never leaks in.
        h = jnp.dot(w, h, preferred_element_type=jnp.float32) + b
        if use_sigmoid:
            h = jax.nn.sigmoid(h)
    o_ref[...] = h[:1, :]


def init_params(key):
    """PyTorch-style Linear init: W:(out,in), b:(out,), U[-1/sqrt(fan_in), +]."""
    params = []
    for (fan_in, fan_out, _) in LAYER_DIMS:
        key, kw, kb = jax.random.split(key, 3)
        bound = 1.0 / float(fan_in) ** 0.5
        w = jax.random.uniform(kw, (fan_out, fan_in), jnp.float32, -bound, bound)
        b = jax.random.uniform(kb, (fan_out,), jnp.float32, -bound, bound)
        params.append((w, b))
    return params


def pack_params(params):
    """Pack all (W, b) pairs into one zero-padded f32 slab (single operand/DMA)."""
    slab = jnp.zeros((NUM_LAYERS, F_PAD, SLAB_COLS), jnp.float32)
    for li, ((w, b), (fan_in, fan_out, _)) in enumerate(zip(params, LAYER_DIMS)):
        slab = slab.at[li, :fan_out, :fan_in].set(w.astype(jnp.float32))
        slab = slab.at[li, :fan_out, F_PAD].set(b.astype(jnp.float32))
    return slab


def _forward_impl(x, slab):
    B = x.shape[0]
    # Lane tile: 512 columns (good HBM-roofline tile), rounded down for tiny B.
    tb = min(512, _round_up(max(B, 1), 128))
    b_pad = _round_up(B, tb)

    x_t = jnp.transpose(x).astype(jnp.float32)           # (4, B) — batch on lanes
    if b_pad != B:
        x_t = jnp.pad(x_t, ((0, 0), (0, b_pad - B)))      # zero-pad batch tail

    out = pl.pallas_call(
        mlp_kernel,
        out_shape=jax.ShapeDtypeStruct((1, b_pad), jnp.float32),
        grid=(b_pad // tb,),
        in_specs=[
            # Activations: a new lane tile per grid step (pipelined).
            pl.BlockSpec((IN_FEATURES, tb), lambda i: (0, i)),
            # Packed params: constant block index -> stays VMEM-resident.
            pl.BlockSpec((NUM_LAYERS, F_PAD, SLAB_COLS), lambda i: (0, 0, 0)),
        ],
        out_specs=pl.BlockSpec((1, tb), lambda i: (0, i)),
        compiler_params=pltpu.CompilerParams(
            dimension_semantics=("parallel",),   # megacore sharding on v7x
            vmem_limit_bytes=32 * 1024 * 1024,   # explicit budget, safe on v5e/v6e/v7x
        ),
    )(x_t, slab)

    # (1, b_pad) -> drop padding -> (B, 1); same memory order, pure reshape.
    return out[:, :B].reshape(B, 1)


model1_forward = jax.jit(_forward_impl)


def reference_forward(x, params):
    """Plain-JAX reference of the same MLP (PyTorch weight layout)."""
    h = x.astype(jnp.float32)
    for (w, b), (_, _, use_sig) in zip(params, LAYER_DIMS):
        h = jnp.dot(h, w.T, precision=jax.lax.Precision.HIGHEST) + b
        if use_sig:
            h = jax.nn.sigmoid(h)
    return h


if __name__ == "__main__":
    key = jax.random.PRNGKey(0)
    params = init_params(key)
    slab = pack_params(params)

    # Small batch (matches the (N, 4) input the module expects).
    B = 8
    x = jax.random.normal(jax.random.fold_in(key, 123), (B, IN_FEATURES),
                          dtype=jnp.float32)
    out = jax.block_until_ready(model1_forward(x, slab))
    ref = reference_forward(x, params)
    assert out.shape == (B, 1)
    assert jnp.allclose(out, ref, atol=1e-4, rtol=1e-4), float(
        jnp.max(jnp.abs(out - ref)))

    # Larger batch: exercises multiple grid steps (pipelining / v7x megacore).
    B2 = 1536
    x2 = jax.random.normal(jax.random.fold_in(key, 7), (B2, IN_FEATURES),
                           dtype=jnp.float32)
    out2 = jax.block_until_ready(model1_forward(x2, slab))
    ref2 = reference_forward(x2, params)
    assert out2.shape == (B2, 1)
    assert jnp.allclose(out2, ref2, atol=1e-4, rtol=1e-4), float(
        jnp.max(jnp.abs(out2 - ref2)))

    print("KERNEL_OK")
</pallas_src>

<mosaic_0001>
module attributes {stable_mosaic.version = 11 : i64} {
  func.func @mlp_kernel(%arg0: i32, %arg1: memref<4x128xf32, #tpu.memory_space<vmem>>, %arg2: memref<7x16x17xf32, #tpu.memory_space<vmem>>, %arg3: memref<1x128xf32, #tpu.memory_space<vmem>>) attributes {dimension_semantics = [#tpu.dimension_semantics<parallel>], iteration_bounds = array<i64: 1>, scalar_prefetch = 0 : i64, scratch_operands = 0 : i64, tpu.core_type = #tpu.core_type<tc>, window_params = [{transform_indices = @transform_0, window_bounds = array<i64: 4, 128>}, {pipeline_mode = #tpu.pipeline_mode<synchronous>, transform_indices = @transform_1, window_bounds = array<i64: 7, 16, 17>}, {transform_indices = @transform_2, window_bounds = array<i64: 1, 128>}]} {
    %c0 = arith.constant 0 : index
    %c0_0 = arith.constant 0 : index
    %0 = vector.load %arg1[%c0, %c0_0] : memref<4x128xf32, #tpu.memory_space<vmem>>, vector<4x128xf32>
    %c0_1 = arith.constant 0 : index
    %c0_2 = arith.constant 0 : index
    %c0_3 = arith.constant 0 : index
    %1 = vector.load %arg2[%c0_1, %c0_2, %c0_3] : memref<7x16x17xf32, #tpu.memory_space<vmem>>, vector<1x16x17xf32>
    %2 = vector.shape_cast %1 : vector<1x16x17xf32> to vector<16x17xf32>
    %3 = vector.extract_strided_slice %2 {offsets = [0, 0], sizes = [16, 4], strides = [1, 1]} : vector<16x17xf32> to vector<16x4xf32>
    %4 = vector.extract_strided_slice %2 {offsets = [0, 16], sizes = [16, 1], strides = [1, 1]} : vector<16x17xf32> to vector<16x1xf32>
    %cst = arith.constant dense<0.000000e+00> : vector<16x128xf32>
    %5 = tpu.matmul %3, %0, %cst {dimension_numbers = #tpu.dot_dimension_numbers<[1], [0], [0], [1], [0, 0, 1, 1], [], []>} : vector<16x4xf32>, vector<4x128xf32>, vector<16x128xf32> -> vector<16x128xf32>
    %6 = vector.broadcast %4 : vector<16x1xf32> to vector<16x128xf32>
    %7 = arith.addf %5, %6 : vector<16x128xf32>
    %8 = arith.negf %7 : vector<16x128xf32>
    %9 = math.exp %8 : vector<16x128xf32>
    %cst_4 = arith.constant 1.000000e+00 : f32
    %10 = vector.broadcast %cst_4 : f32 to vector<16x128xf32>
    %11 = arith.addf %10, %9 : vector<16x128xf32>
    %12 = arith.divf %10, %11 : vector<16x128xf32>
    %c1 = arith.constant 1 : index
    %c0_5 = arith.constant 0 : index
    %c0_6 = arith.constant 0 : index
    %13 = vector.load %arg2[%c1, %c0_5, %c0_6] : memref<7x16x17xf32, #tpu.memory_space<vmem>>, vector<1x16x17xf32>
    %14 = vector.shape_cast %13 : vector<1x16x17xf32> to vector<16x17xf32>
    %15 = vector.extract_strided_slice %14 {offsets = [0, 0], sizes = [16, 16], strides = [1, 1]} : vector<16x17xf32> to vector<16x16xf32>
    %16 = vector.extract_strided_slice %14 {offsets = [0, 16], sizes = [16, 1], strides = [1, 1]} : vector<16x17xf32> to vector<16x1xf32>
    %cst_7 = arith.constant dense<0.000000e+00> : vector<16x128xf32>
    %17 = tpu.matmul %15, %12, %cst_7 {dimension_numbers = #tpu.dot_dimension_numbers<[1], [0], [0], [1], [0, 0, 1, 1], [], []>} : vector<16x16xf32>, vector<16x128xf32>, vector<16x128xf32> -> vector<16x128xf32>
    %18 = vector.broadcast %16 : vector<16x1xf32> to vector<16x128xf32>
    %19 = arith.addf %17, %18 : vector<16x128xf32>
    %20 = arith.negf %19 : vector<16x128xf32>
    %21 = math.exp %20 : vector<16x128xf32>
    %cst_8 = arith.constant 1.000000e+00 : f32
    %22 = vector.broadcast %cst_8 : f32 to vector<16x128xf32>
    %23 = arith.addf %22, %21 : vector<16x128xf32>
    %24 = arith.divf %22, %23 : vector<16x128xf32>
    %c2 = arith.constant 2 : index
    %c0_9 = arith.constant 0 : index
    %c0_10 = arith.constant 0 : index
    %25 = vector.load %arg2[%c2, %c0_9, %c0_10] : memref<7x16x17xf32, #tpu.memory_space<vmem>>, vector<1x16x17xf32>
    %26 = vector.shape_cast %25 : vector<1x16x17xf32> to vector<16x17xf32>
    %27 = vector.extract_strided_slice %26 {offsets = [0, 0], sizes = [16, 16], strides = [1, 1]} : vector<16x17xf32> to vector<16x16xf32>
    %28 = vector.extract_strided_slice %26 {offsets = [0, 16], sizes = [16, 1], strides = [1, 1]} : vector<16x17xf32> to vector<16x1xf32>
    %cst_11 = arith.constant dense<0.000000e+00> : vector<16x128xf32>
    %29 = tpu.matmul %27, %24, %cst_11 {dimension_numbers = #tpu.dot_dimension_numbers<[1], [0], [0], [1], [0, 0, 1, 1], [], []>} : vector<16x16xf32>, vector<16x128xf32>, vector<16x128xf32> -> vector<16x128xf32>
    %30 = vector.broadcast %28 : vector<16x1xf32> to vector<16x128xf32>
    %31 = arith.addf %29, %30 : vector<16x128xf32>
    %32 = arith.negf %31 : vector<16x128xf32>
    %33 = math.exp %32 : vector<16x128xf32>
    %cst_12 = arith.constant 1.000000e+00 : f32
    %34 = vector.broadcast %cst_12 : f32 to vector<16x128xf32>
    %35 = arith.addf %34, %33 : vector<16x128xf32>
    %36 = arith.divf %34, %35 : vector<16x128xf32>
    %c3 = arith.constant 3 : index
    %c0_13 = arith.constant 0 : index
    %c0_14 = arith.constant 0 : index
    %37 = vector.load %arg2[%c3, %c0_13, %c0_14] : memref<7x16x17xf32, #tpu.memory_space<vmem>>, vector<1x16x17xf32>
    %38 = vector.shape_cast %37 : vector<1x16x17xf32> to vector<16x17xf32>
    %39 = vector.extract_strided_slice %38 {offsets = [0, 0], sizes = [16, 16], strides = [1, 1]} : vector<16x17xf32> to vector<16x16xf32>
    %40 = vector.extract_strided_slice %38 {offsets = [0, 16], sizes = [16, 1], strides = [1, 1]} : vector<16x17xf32> to vector<16x1xf32>
    %cst_15 = arith.constant dense<0.000000e+00> : vector<16x128xf32>
    %41 = tpu.matmul %39, %36, %cst_15 {dimension_numbers = #tpu.dot_dimension_numbers<[1], [0], [0], [1], [0, 0, 1, 1], [], []>} : vector<16x16xf32>, vector<16x128xf32>, vector<16x128xf32> -> vector<16x128xf32>
    %42 = vector.broadcast %40 : vector<16x1xf32> to vector<16x128xf32>
    %43 = arith.addf %41, %42 : vector<16x128xf32>
    %44 = arith.negf %43 : vector<16x128xf32>
    %45 = math.exp %44 : vector<16x128xf32>
    %cst_16 = arith.constant 1.000000e+00 : f32
    %46 = vector.broadcast %cst_16 : f32 to vector<16x128xf32>
    %47 = arith.addf %46, %45 : vector<16x128xf32>
    %48 = arith.divf %46, %47 : vector<16x128xf32>
    %c4 = arith.constant 4 : index
    %c0_17 = arith.constant 0 : index
    %c0_18 = arith.constant 0 : index
    %49 = vector.load %arg2[%c4, %c0_17, %c0_18] : memref<7x16x17xf32, #tpu.memory_space<vmem>>, vector<1x16x17xf32>
    %50 = vector.shape_cast %49 : vector<1x16x17xf32> to vector<16x17xf32>
    %51 = vector.extract_strided_slice %50 {offsets = [0, 0], sizes = [16, 16], strides = [1, 1]} : vector<16x17xf32> to vector<16x16xf32>
    %52 = vector.extract_strided_slice %50 {offsets = [0, 16], sizes = [16, 1], strides = [1, 1]} : vector<16x17xf32> to vector<16x1xf32>
    %cst_19 = arith.constant dense<0.000000e+00> : vector<16x128xf32>
    %53 = tpu.matmul %51, %48, %cst_19 {dimension_numbers = #tpu.dot_dimension_numbers<[1], [0], [0], [1], [0, 0, 1, 1], [], []>} : vector<16x16xf32>, vector<16x128xf32>, vector<16x128xf32> -> vector<16x128xf32>
    %54 = vector.broadcast %52 : vector<16x1xf32> to vector<16x128xf32>
    %55 = arith.addf %53, %54 : vector<16x128xf32>
    %56 = arith.negf %55 : vector<16x128xf32>
    %57 = math.exp %56 : vector<16x128xf32>
    %cst_20 = arith.constant 1.000000e+00 : f32
    %58 = vector.broadcast %cst_20 : f32 to vector<16x128xf32>
    %59 = arith.addf %58, %57 : vector<16x128xf32>
    %60 = arith.divf %58, %59 : vector<16x128xf32>
    %c5 = arith.constant 5 : index
    %c0_21 = arith.constant 0 : index
    %c0_22 = arith.constant 0 : index
    %61 = vector.load %arg2[%c5, %c0_21, %c0_22] : memref<7x16x17xf32, #tpu.memory_space<vmem>>, vector<1x16x17xf32>
    %62 = vector.shape_cast %61 : vector<1x16x17xf32> to vector<16x17xf32>
    %63 = vector.extract_strided_slice %62 {offsets = [0, 0], sizes = [16, 16], strides = [1, 1]} : vector<16x17xf32> to vector<16x16xf32>
    %64 = vector.extract_strided_slice %62 {offsets = [0, 16], sizes = [16, 1], strides = [1, 1]} : vector<16x17xf32> to vector<16x1xf32>
    %cst_23 = arith.constant dense<0.000000e+00> : vector<16x128xf32>
    %65 = tpu.matmul %63, %60, %cst_23 {dimension_numbers = #tpu.dot_dimension_numbers<[1], [0], [0], [1], [0, 0, 1, 1], [], []>} : vector<16x16xf32>, vector<16x128xf32>, vector<16x128xf32> -> vector<16x128xf32>
    %66 = vector.broadcast %64 : vector<16x1xf32> to vector<16x128xf32>
    %67 = arith.addf %65, %66 : vector<16x128xf32>
    %68 = arith.negf %67 : vector<16x128xf32>
    %69 = math.exp %68 : vector<16x128xf32>
    %cst_24 = arith.constant 1.000000e+00 : f32
    %70 = vector.broadcast %cst_24 : f32 to vector<16x128xf32>
    %71 = arith.addf %70, %69 : vector<16x128xf32>
    %72 = arith.divf %70, %71 : vector<16x128xf32>
    %c6 = arith.constant 6 : index
    %c0_25 = arith.constant 0 : index
    %c0_26 = arith.constant 0 : index
    %73 = vector.load %arg2[%c6, %c0_25, %c0_26] : memref<7x16x17xf32, #tpu.memory_space<vmem>>, vector<1x16x17xf32>
    %74 = vector.shape_cast %73 : vector<1x16x17xf32> to vector<16x17xf32>
    %75 = vector.extract_strided_slice %74 {offsets = [0, 0], sizes = [16, 16], strides = [1, 1]} : vector<16x17xf32> to vector<16x16xf32>
    %76 = vector.extract_strided_slice %74 {offsets = [0, 16], sizes = [16, 1], strides = [1, 1]} : vector<16x17xf32> to vector<16x1xf32>
    %cst_27 = arith.constant dense<0.000000e+00> : vector<16x128xf32>
    %77 = tpu.matmul %75, %72, %cst_27 {dimension_numbers = #tpu.dot_dimension_numbers<[1], [0], [0], [1], [0, 0, 1, 1], [], []>} : vector<16x16xf32>, vector<16x128xf32>, vector<16x128xf32> -> vector<16x128xf32>
    %78 = vector.broadcast %76 : vector<16x1xf32> to vector<16x128xf32>
    %79 = arith.addf %77, %78 : vector<16x128xf32>
    %80 = vector.extract_strided_slice %79 {offsets = [0, 0], sizes = [1, 128], strides = [1, 1]} : vector<16x128xf32> to vector<1x128xf32>
    %c0_28 = arith.constant 0 : index
    %c0_29 = arith.constant 0 : index
    %81 = vector.load %arg3[%c0_28, %c0_29] : memref<1x128xf32, #tpu.memory_space<vmem>>, vector<1x128xf32>
    tpu.vector_store %arg3[%c0_28, %c0_29], %80 {strides = array<i32>} : memref<1x128xf32, #tpu.memory_space<vmem>>, vector<1x128xf32>,
    return
  }
  func.func @transform_0(%arg0: i32) -> (i32, i32) {
    %c0_i32 = arith.constant 0 : i32
    %c0_i32_0 = arith.constant 0 : i32
    return %c0_i32, %arg0 : i32, i32
  }
  func.func @transform_1(%arg0: i32) -> (i32, i32, i32) {
    %c0_i32 = arith.constant 0 : i32
    %c0_i32_0 = arith.constant 0 : i32
    %c0_i32_1 = arith.constant 0 : i32
    %c0_i32_2 = arith.constant 0 : i32
    return %c0_i32, %c0_i32_0, %c0_i32_1 : i32, i32, i32
  }
  func.func @transform_2(%arg0: i32) -> (i32, i32) {
    %c0_i32 = arith.constant 0 : i32
    %c0_i32_0 = arith.constant 0 : i32
    return %c0_i32, %arg0 : i32, i32
  }
}

</mosaic_0001>

<bundles_post_ra>
// kernel: _forward_impl.1
= control target key start
LH: loop header
LB: loop body
LE: loop exit
PB: predicated region body
PF: predicated region fallthrough
CT: control target
= control target key end

     0   :  { %7 = vsyncpa [#allocation3], 0  ;;  %s928_s9 = smov [#allocation2]   ;;  %s992_s0 = inlined_call_operand.vmem [shape: f32[4,128], index: 0, kind: input, shape index: {}]   ;;  %s993_s1 = inlined_call_operand.hbm [shape: f32[7,16,17], index: 1, kind: input, shape index: {}]   ;;  %s994_s2 = inlined_call_operand.vmem [shape: f32[1,128], index: 2, kind: output, shape index: {}]  }
   0x1   :  { %s15_s10 = sshll.u32 %s928_s9, 4  ;;  %s16_s10 = int_to_ptr.vmem [resolvable:$true] %s15_s10 }
   0x2   :  { %s914_s11 = scalar_lea.vmem %s16_s10, 1792  ;;  %p919_p1 = scmp.lt.s32.totalorder %s16_s10, %s16_s10 }
   0x3   :  { %p915_p0 = scmp.ne.s32.totalorder %s16_s10, %s914_s11  ;;  %p920_p2 = scmp.lt.s32.totalorder %s914_s11, %s914_s11 }
   0x5   :  { %p921_p3 = por %p920_p2, %p919_p1 }
   0x7   :  { %p922_p4 = pnand %p921_p3, %p915_p0 }
   0x9   :  { %925 = shalt.err (!%p922_p4)
}
   0xa   :  { %s929_s12 = smov 128   ;;  %s930_s13 = smov 8  }
   0xb   :  { %21 = dma.hbm_to_vmem [thread:$0]  %s993_s1, 1792, %s16_s10, [#allocation3], %s929_s12, %s929_s12, %s930_s13  }
   0xc   :  { %926 = dma.done.wait [#allocation3], 1792  }
   0xd   :  { %927 = vsyncadd [#allocation3], 4294965504  ;;  %v931_v0 = vmov 16   ;;  %vm43_vm0 = vcmask 1043456   ;;  %vm38_vm1 = vcmask 31744   ;;  %v26_v2 = vld [vmem:[#allocation2] sm:$0xff] }
   0xe   :  { %856 = vset.pattern.permute.xlu0 %v931_v0  ;;  %857 = vset.pattern.permute.xlu1 %v931_v0  ;;  %v25_v1 = vld [vmem:[%s992_s0] sm:$0xf]  ;;  %v27_v3 = vld [vmem:[#allocation2 + $0x8] sm:$0xff]  ;;  %v956_v5 = vld [vmem:[#allocation2 + $0x38] sm:$0xff]  ;;  %vm147_vm2 = vcmask 130048  }
   0xf   :  { %805 = vmatprep.subr.msk.mxu0 %vm43_vm0, %v25_v1  ;;  %807 = vmatprep.mubr.msk.f32.mxu0 %vm38_vm1, %v26_v2  ;;  %v953_v4 = vld [vmem:[#allocation2 + $0x28] sm:$0xff]  ;;  %v962_v7 = vld [vmem:[#allocation2 + $0x58] sm:$0xff]  ;;  %v965_v8 = vld [vmem:[#allocation2 + $0x60] sm:$0xff] }
  0x10   :  { %806 = vmatpush3.msk.msra.mxu0 %vm43_vm0, %v25_v1  ;;  %35 = vperm.xlu0 %856, %v27_v3   ;;  %v959_v6 = vld [vmem:[#allocation2 + $0x48] sm:$0xff]  ;;  %v135_v9 = vld [vmem:[#allocation2 + $0x10] sm:$0xff]  ;;  %v136_v10 = vld [vmem:[#allocation2 + $0x18] sm:$0xff] }
  0x11   :  { %808 = vmatmul.mubr.msk.f32.vlgmr.msra.gmra.mxu0 %vm38_vm1, %v27_v3  ;;  %814 = vmatprep.mubr.msk.f32.mxu1 %vm147_vm2, %v135_v9  ;;  %v240_v11 = vld [vmem:[#allocation2 + $0x20] sm:$0xff]  ;;  %v344_v12 = vld [vmem:[#allocation2 + $0x30] sm:$0xff] }
  0x12   :  { %144 = vperm.xlu1 %857, %v136_v10   ;;  %821 = vmatprep.mubr.msk.f32.mxu0 %vm147_vm2, %v240_v11  ;;  %v448_v13 = vld [vmem:[#allocation2 + $0x40] sm:$0xff]  ;;  %v970_v14 = vld [vmem:[#allocation2 + $0x50] sm:$0xff] }
  0x14   :  { %30 = vperm.xlu0 %856, %v26_v2  }
  0x16   :  { %139 = vperm.xlu1 %857, %v135_v9  }
  0x18   :  { %249 = vperm.xlu0 %856, %v953_v4  }
  0x1a   :  { %244 = vperm.xlu1 %857, %v240_v11  }
  0x1c   :  { %353 = vperm.xlu0 %856, %v956_v5  }
  0x1e   :  { %348 = vperm.xlu1 %857, %v344_v12  }
  0x20   :  { %457 = vperm.xlu0 %856, %v959_v6  }
  0x22   :  { %452 = vperm.xlu1 %857, %v448_v13  }
  0x24   :  { %561 = vperm.xlu0 %856, %v962_v7  }
  0x26   :  { %556 = vperm.xlu1 %857, %v970_v14  }
  0x28   :  { %660 = vperm.xlu0 %856, %v965_v8  }
  0x8b   :  { %v36_v15 = vpop.permute.xlu0 %35 }
  0x8d   :  { %v145_v29 = vpop.permute.xlu1 %144 }
  0x8f   :  { %v31_v18 = vpop.permute.xlu0 %30 }
  0x91   :  { %v140_v32 = vpop.permute.xlu1 %139 }
  0x93   :  { %v250_v43 = vpop.permute.xlu0 %249 }
  0x95   :  { %v245_v46 = vpop.permute.xlu1 %244 }
  0x97   :  { %v354_v57 = vpop.permute.xlu0 %353 }
  0x99   :  { %v349_v60 = vpop.permute.xlu1 %348 }
  0xd1   :  { %v809_v16 = vpop.f32.mrf.mxu0 }
  0xd2   :  { %v119_v17 = vadd.f32 %v809_v16, %v36_v15 }
  0xd3   :  { %v113_v19 = vpop.f32.mrf.mxu0 }
  0xd4   :  { %v755_v20 = vmul.f32 -1.442695, %v119_v17  ;;  %v114_v21 = vadd.f32 %v113_v19, %v31_v18 }
  0xd6   :  { %858 = vpow2.f32 %v755_v20  ;;  %v754_v22 = vmul.f32 -1.442695, %v114_v21 }
  0xd8   :  { %860 = vpow2.f32 %v754_v22 }
  0xe3   :  { %v859_v23 = vpop.eup %858 }
  0xe4   :  { %v129_v24 = vadd.f32 1.0, %v859_v23 }
  0xe5   :  { %v861_v25 = vpop.eup %860 }
  0xe6   :  { %862 = vrcp.f32 %v129_v24  ;;  %v128_v26 = vadd.f32 1.0, %v861_v25 }
  0xe8   :  { %864 = vrcp.f32 %v128_v26 }
  0xf3   :  { %v863_v27 = vpop.eup %862 }
  0xf4   :  { %810 = vmatprep.subr.mxu1 %v863_v27 }
  0xf5   :  { %v865_v28 = vpop.eup %864  ;;  %811 = vmatpush3.msra.mxu1 %v863_v27 }
  0xf6   :  { %812 = vmatprep.subr.mxu1 %v865_v28 }
  0xf7   :  { %813 = vmatpush3.msra.mxu1 %v865_v28 }
  0xf8   :  { %815 = vmatmul.mubr.msk.f32.vlgmr.msra.gmra.mxu1 %vm147_vm2, %v136_v10  ;;  %v458_v10 = vpop.permute.xlu0 %457 }
  0xf9   :  { %828 = vmatprep.mubr.msk.f32.mxu1 %vm147_vm2, %v344_v12 }
 0x1b8   :  { %v816_v30 = vpop.f32.mrf.mxu1 }
 0x1b9   :  { %v224_v31 = vadd.f32 %v816_v30, %v145_v29 }
 0x1ba   :  { %v218_v33 = vpop.f32.mrf.mxu1 }
 0x1bb   :  { %v759_v34 = vmul.f32 -1.442695, %v224_v31  ;;  %v219_v35 = vadd.f32 %v218_v33, %v140_v32 }
 0x1bd   :  { %866 = vpow2.f32 %v759_v34  ;;  %v758_v36 = vmul.f32 -1.442695, %v219_v35 }
 0x1bf   :  { %868 = vpow2.f32 %v758_v36 }
 0x1ca   :  { %v867_v37 = vpop.eup %866 }
 0x1cb   :  { %v234_v38 = vadd.f32 1.0, %v867_v37 }
 0x1cc   :  { %v869_v39 = vpop.eup %868 }
 0x1cd   :  { %870 = vrcp.f32 %v234_v38  ;;  %v233_v40 = vadd.f32 1.0, %v869_v39 }
 0x1cf   :  { %872 = vrcp.f32 %v233_v40 }
 0x1da   :  { %v871_v41 = vpop.eup %870 }
 0x1db   :  { %817 = vmatprep.subr.mxu0 %v871_v41 }
 0x1dc   :  { %v873_v42 = vpop.eup %872  ;;  %818 = vmatpush3.msra.mxu0 %v871_v41 }
 0x1dd   :  { %819 = vmatprep.subr.mxu0 %v873_v42 }
 0x1de   :  { %820 = vmatpush3.msra.mxu0 %v873_v42 }
 0x1df   :  { %822 = vmatmul.mubr.msk.f32.vlgmr.msra.gmra.mxu0 %vm147_vm2, %v953_v4 }
 0x1e0   :  { %835 = vmatprep.mubr.msk.f32.mxu0 %vm147_vm2, %v448_v13  ;;  %v453_v13 = vpop.permute.xlu1 %452 }
 0x1e4   :  { %v557_v25 = vpop.permute.xlu1 %556 }
 0x29f   :  { %v823_v44 = vpop.f32.mrf.mxu0 }
 0x2a0   :  { %v328_v45 = vadd.f32 %v823_v44, %v250_v43 }
 0x2a1   :  { %v322_v47 = vpop.f32.mrf.mxu0 }
 0x2a2   :  { %v763_v48 = vmul.f32 -1.442695, %v328_v45  ;;  %v323_v49 = vadd.f32 %v322_v47, %v245_v46 }
 0x2a4   :  { %874 = vpow2.f32 %v763_v48  ;;  %v762_v50 = vmul.f32 -1.442695, %v323_v49 }
 0x2a6   :  { %876 = vpow2.f32 %v762_v50 }
 0x2b1   :  { %v875_v51 = vpop.eup %874 }
 0x2b2   :  { %v338_v52 = vadd.f32 1.0, %v875_v51 }
 0x2b3   :  { %v877_v53 = vpop.eup %876 }
 0x2b4   :  { %878 = vrcp.f32 %v338_v52  ;;  %v337_v54 = vadd.f32 1.0, %v877_v53 }
 0x2b6   :  { %880 = vrcp.f32 %v337_v54 }
 0x2c1   :  { %v879_v55 = vpop.eup %878 }
 0x2c2   :  { %824 = vmatprep.subr.mxu1 %v879_v55 }
 0x2c3   :  { %v881_v56 = vpop.eup %880  ;;  %825 = vmatpush3.msra.mxu1 %v879_v55 }
 0x2c4   :  { %826 = vmatprep.subr.mxu1 %v881_v56 }
 0x2c5   :  { %827 = vmatpush3.msra.mxu1 %v881_v56 }
 0x2c6   :  { %829 = vmatmul.mubr.msk.f32.vlgmr.msra.gmra.mxu1 %vm147_vm2, %v956_v5 }
 0x2c7   :  { %842 = vmatprep.mubr.msk.f32.mxu1 %vm147_vm2, %v970_v14 }
 0x386   :  { %v830_v58 = vpop.f32.mrf.mxu1 }
 0x387   :  { %v432_v59 = vadd.f32 %v830_v58, %v354_v57 }
 0x388   :  { %v426_v61 = vpop.f32.mrf.mxu1 }
 0x389   :  { %v767_v62 = vmul.f32 -1.442695, %v432_v59  ;;  %v427_v63 = vadd.f32 %v426_v61, %v349_v60 }
 0x38b   :  { %882 = vpow2.f32 %v767_v62  ;;  %v766_v0 = vmul.f32 -1.442695, %v427_v63 }
 0x38d   :  { %884 = vpow2.f32 %v766_v0 }
 0x398   :  { %v883_v1 = vpop.eup %882 }
 0x399   :  { %v442_v2 = vadd.f32 1.0, %v883_v1 }
 0x39a   :  { %v885_v3 = vpop.eup %884 }
 0x39b   :  { %886 = vrcp.f32 %v442_v2  ;;  %v441_v4 = vadd.f32 1.0, %v885_v3 }
 0x39d   :  { %888 = vrcp.f32 %v441_v4 }
 0x3a8   :  { %v887_v5 = vpop.eup %886 }
 0x3a9   :  { %831 = vmatprep.subr.mxu0 %v887_v5 }
 0x3aa   :  { %v889_v9 = vpop.eup %888  ;;  %832 = vmatpush3.msra.mxu0 %v887_v5 }
 0x3ab   :  { %833 = vmatprep.subr.mxu0 %v889_v9 }
 0x3ac   :  { %834 = vmatpush3.msra.mxu0 %v889_v9 }
 0x3ad   :  { %836 = vmatmul.mubr.msk.f32.vlgmr.msra.gmra.mxu0 %vm147_vm2, %v959_v6 }
 0x3ae   :  { %849 = vmatprep.mubr.msk.f32.mxu0 %vm147_vm2, %v965_v8  ;;  %v562_v8 = vpop.permute.xlu0 %561 }
 0x3b2   :  { %v661_v37 = vpop.permute.xlu0 %660 }
 0x46d   :  { %v837_v11 = vpop.f32.mrf.mxu0 }
 0x46e   :  { %v536_v12 = vadd.f32 %v837_v11, %v458_v10 }
 0x46f   :  { %v530_v14 = vpop.f32.mrf.mxu0 }
 0x470   :  { %v771_v15 = vmul.f32 -1.442695, %v536_v12  ;;  %v531_v16 = vadd.f32 %v530_v14, %v453_v13 }
 0x472   :  { %890 = vpow2.f32 %v771_v15  ;;  %v770_v17 = vmul.f32 -1.442695, %v531_v16 }
 0x474   :  { %892 = vpow2.f32 %v770_v17 }
 0x47f   :  { %v891_v18 = vpop.eup %890 }
 0x480   :  { %v546_v19 = vadd.f32 1.0, %v891_v18 }
 0x481   :  { %v893_v20 = vpop.eup %892 }
 0x482   :  { %894 = vrcp.f32 %v546_v19  ;;  %v545_v21 = vadd.f32 1.0, %v893_v20 }
 0x484   :  { %896 = vrcp.f32 %v545_v21 }
 0x48f   :  { %v895_v6 = vpop.eup %894 }
 0x490   :  { %838 = vmatprep.subr.mxu1 %v895_v6 }
 0x491   :  { %v897_v22 = vpop.eup %896  ;;  %839 = vmatpush3.msra.mxu1 %v895_v6 }
 0x492   :  { %840 = vmatprep.subr.mxu1 %v897_v22 }
 0x493   :  { %841 = vmatpush3.msra.mxu1 %v897_v22 }
 0x494   :  { %843 = vmatmul.mubr.msk.f32.vlgmr.msra.gmra.mxu1 %vm147_vm2, %v962_v7  ;;  %v657_v7 = vld [vmem:[#allocation2 + $0x68] sm:$0xff] }
 0x554   :  { %v844_v23 = vpop.f32.mrf.mxu1 }
 0x555   :  { %v640_v24 = vadd.f32 %v844_v23, %v562_v8 }
 0x556   :  { %v634_v26 = vpop.f32.mrf.mxu1 }
 0x557   :  { %v775_v27 = vmul.f32 -1.442695, %v640_v24  ;;  %v635_v28 = vadd.f32 %v634_v26, %v557_v25 }
 0x559   :  { %898 = vpow2.f32 %v775_v27  ;;  %v774_v29 = vmul.f32 -1.442695, %v635_v28 }
 0x55b   :  { %900 = vpow2.f32 %v774_v29 }
 0x566   :  { %v899_v30 = vpop.eup %898 }
 0x567   :  { %v650_v31 = vadd.f32 1.0, %v899_v30 }
 0x568   :  { %v901_v32 = vpop.eup %900 }
 0x569   :  { %902 = vrcp.f32 %v650_v31  ;;  %v649_v33 = vadd.f32 1.0, %v901_v32 }
 0x56b   :  { %904 = vrcp.f32 %v649_v33 }
 0x576   :  { %v903_v34 = vpop.eup %902 }
 0x577   :  { %845 = vmatprep.subr.mxu0 %v903_v34 }
 0x578   :  { %v905_v35 = vpop.eup %904  ;;  %846 = vmatpush3.msra.mxu0 %v903_v34 }
 0x579   :  { %847 = vmatprep.subr.mxu0 %v905_v35 }
 0x57a   :  { %848 = vmatpush3.msra.mxu0 %v905_v35 }
 0x57b   :  { %850 = vmatmul.mubr.msk.f32.vlgmr.msra.gmra.mxu0 %vm147_vm2, %v657_v7 }
 0x63b   :  { %v851_v36 = vpop.f32.mrf.mxu0 }
 0x63d   :  { %v737_v38 = vpop.f32.mrf.mxu0 }
 0x63e   :  { %v738_v39 = vadd.f32 %v737_v38, %v661_v37 }
 0x640   :  { %745 = vst [vmem:[%s994_s2] sm:$0x1] %v738_v39 }
 0x641   :  { %750 = vsyncpa [#allocation3], 1 }

</bundles_post_ra>
